<compile_context>
chip_gen: v7x
topology: tpu7x:2x2x1
jax: 0.10.0
libtpu: 0.0.40
codegen_flags: <defaults>
</compile_context>

<pallas_src>
import functools
import math

import jax
import jax.numpy as jnp
from jax.experimental import pallas as pl
from jax.experimental.pallas import tpu as pltpu

BN_EPS = 1e-5
WIN = 9           # temporal kernel size
K_SPATIAL = 3     # number of adjacency hops
VMEM_LIMIT = 48 * 1024 * 1024   # explicit scoped-VMEM limit (fits v5e/v6e/v7x)

_VMEM = pl.BlockSpec(memory_space=pltpu.MemorySpace.VMEM)


def _full_spec(arr):
    """Whole-array block, re-fetched (cheaply) every grid step."""
    nd = arr.ndim
    return pl.BlockSpec(arr.shape, lambda *_: (0,) * nd)


def _cparams(parallel=True):
    if parallel:
        return pltpu.CompilerParams(dimension_semantics=("parallel",),
                                    vmem_limit_bytes=VMEM_LIMIT)
    return pltpu.CompilerParams(vmem_limit_bytes=VMEM_LIMIT)


# ----------------------------------------------------------------------------
# Kernels
# ----------------------------------------------------------------------------
def _input_stats_kernel(x_ref, st_ref):
    """Per-tile partial (sum, sumsq) per channel for the branch input BN."""
    V, NB, T, C = x_ref.shape
    x2 = x_ref[...].reshape(V * NB * T, C)
    s = jnp.sum(x2, axis=0, keepdims=True)
    q = jnp.sum(x2 * x2, axis=0, keepdims=True)
    st_ref[0] = jnp.concatenate([s, q], axis=0)


def _sgc_kernel(*refs, at, pre_bn, pre_count):
    """SpatialGraphConv compute pass, tiled over N.

    Aggregate over the graph FIRST with baked-in adjacency scalars (VPU FMAs,
    zeros skipped), then one bf16 MXU matmul per joint with contraction K*Cin.
    Emits pre-BN output + partial (sum, sumsq) stats.  Optionally fuses the
    branch input-BN normalize (pre_bn).
    """
    if pre_bn:
        x_ref, pst_ref, pg_ref, pb_ref, w_ref, be_ref, y_ref, st_ref = refs
    else:
        x_ref, w_ref, be_ref, y_ref, st_ref = refs
    V, NB, T, Cin = x_ref.shape
    Cout = y_ref.shape[-1]
    K = len(at)
    rows = NB * T

    if pre_bn:
        s = jnp.sum(pst_ref[...], axis=0)                       # (2, Cin)
        mean = s[0:1] * (1.0 / pre_count)
        var = jnp.maximum(s[1:2] * (1.0 / pre_count) - mean * mean, 0.0)
        scale = jax.lax.rsqrt(var + BN_EPS) * pg_ref[...]
        shift = pb_ref[...] - mean * scale

    xs = []
    for v in range(V):
        xv = x_ref[v].astype(jnp.float32)                       # (NB, T, Cin)
        if pre_bn:
            xv = xv * scale + shift
        xs.append(xv)

    s_loc = jnp.zeros((1, Cout), jnp.float32)
    q_loc = jnp.zeros((1, Cout), jnp.float32)
    for w in range(V):
        parts = []
        for k in range(K):
            acc = None
            for v in range(V):
                a = at[k][w][v]
                if a == 0.0:          # exploit adjacency sparsity
                    continue
                term = xs[v] if a == 1.0 else xs[v] * a
                acc = term if acc is None else acc + term
            if acc is None:
                acc = jnp.zeros((NB, T, Cin), jnp.float32)
            parts.append(acc)
        xa = jnp.concatenate(parts, axis=-1)                    # (NB, T, K*Cin)
        zw = jnp.dot(xa.reshape(rows, K * Cin).astype(jnp.bfloat16),
                     w_ref[...], preferred_element_type=jnp.float32)
        zw = zw + be_ref[w:w + 1, :]
        y_ref[w] = zw.reshape(NB, T, Cout)
        s_loc = s_loc + jnp.sum(zw, axis=0, keepdims=True)
        q_loc = q_loc + jnp.sum(zw * zw, axis=0, keepdims=True)
    st_ref[0] = jnp.concatenate([s_loc, q_loc], axis=0)


def _tcn_kernel(y1_ref, st1_ref, g1_ref, b1_ref, wt_ref, bt_ref,
                y2_ref, st2_ref, xp_ref, *, stride, count1, t_in, t_out):
    """Temporal conv compute pass, tiled over V.

    Fuses the SGC BatchNorm(train)+ReLU (using global stats reduced from the
    partial-stats input), pads in VMEM scratch (no HBM pad round trip), and
    for stride 2 parity-splits the input so every tap matmul only processes
    Tout rows.  Emits pre-BN output + partial stats.
    """
    _, N, _, C = y1_ref.shape
    pad = (WIN - 1) // 2

    s = jnp.sum(st1_ref[...], axis=0)
    mean = s[0:1] * (1.0 / count1)
    var = jnp.maximum(s[1:2] * (1.0 / count1) - mean * mean, 0.0)
    scale = jax.lax.rsqrt(var + BN_EPS) * g1_ref[...]
    shift = b1_ref[...] - mean * scale
    z = jnp.maximum(y1_ref[0] * scale + shift, 0.0)             # (N, T, C) f32

    acc = jnp.zeros((N * t_out, C), jnp.float32)
    if stride == 1:
        xp_ref[:, 0:pad, :] = jnp.zeros((N, pad, C), xp_ref.dtype)
        xp_ref[:, pad + t_in:, :] = jnp.zeros((N, pad, C), xp_ref.dtype)
        xp_ref[:, pad:pad + t_in, :] = z.astype(xp_ref.dtype)
        for dt in range(WIN):
            sl = xp_ref[:, dt:dt + t_out, :]
            acc = acc + jnp.dot(sl.reshape(N * t_out, C), wt_ref[dt],
                                preferred_element_type=jnp.float32)
    else:  # stride == 2: parity-split, every tap processes exactly t_out rows
        th = t_in // 2
        hp = pad // 2
        zr = z.reshape(N, th, 2, C)
        xp_ref[:, :, 0:hp, :] = jnp.zeros((2, N, hp, C), xp_ref.dtype)
        xp_ref[:, :, hp + th:, :] = jnp.zeros((2, N, hp, C), xp_ref.dtype)
        xp_ref[0, :, hp:hp + th, :] = zr[:, :, 0, :].astype(xp_ref.dtype)
        xp_ref[1, :, hp:hp + th, :] = zr[:, :, 1, :].astype(xp_ref.dtype)
        for dt in range(WIN):
            r, a = dt % 2, dt // 2
            sl = xp_ref[r, :, a:a + t_out, :]
            acc = acc + jnp.dot(sl.reshape(N * t_out, C), wt_ref[dt],
                                preferred_element_type=jnp.float32)

    y = acc + bt_ref[...]
    y2_ref[0] = y.reshape(N, t_out, C)
    st2_ref[0] = jnp.concatenate([jnp.sum(y, axis=0, keepdims=True),
                                  jnp.sum(y * y, axis=0, keepdims=True)], axis=0)


def _res_kernel(x_ref, wr_ref, br_ref, yr_ref, st_ref, *, stride, t_out):
    """Module-residual path: strided 1x1 conv (pre-BN) + partial stats."""
    _, N, T, Cin = x_ref.shape
    Cout = yr_ref.shape[-1]
    xv = x_ref[0]
    if stride > 1:
        xv = xv.reshape(N, t_out, stride, Cin)[:, :, 0, :]
    y = jnp.dot(xv.reshape(N * t_out, Cin).astype(jnp.bfloat16), wr_ref[...],
                preferred_element_type=jnp.float32) + br_ref[...]
    yr_ref[0] = y.reshape(N, t_out, Cout)
    st_ref[0] = jnp.concatenate([jnp.sum(y, axis=0, keepdims=True),
                                 jnp.sum(y * y, axis=0, keepdims=True)], axis=0)


def _finalize_kernel(*refs, res_mode, count, count_r):
    """Tiled BN(train) normalize + residual add + ReLU for the TCN output."""
    if res_mode == "bn":
        y_ref, st_ref, g_ref, b_ref, r_ref, rst_ref, rg_ref, rb_ref, o_ref = refs
    elif res_mode == "identity":
        y_ref, st_ref, g_ref, b_ref, r_ref, o_ref = refs
    else:  # "zero"
        y_ref, st_ref, g_ref, b_ref, o_ref = refs

    s = jnp.sum(st_ref[...], axis=0)
    mean = s[0:1] * (1.0 / count)
    var = jnp.maximum(s[1:2] * (1.0 / count) - mean * mean, 0.0)
    scale = jax.lax.rsqrt(var + BN_EPS) * g_ref[...]
    shift = b_ref[...] - mean * scale
    y = y_ref[0] * scale + shift

    if res_mode == "identity":
        y = y + r_ref[0]
    elif res_mode == "bn":
        sr = jnp.sum(rst_ref[...], axis=0)
        mr = sr[0:1] * (1.0 / count_r)
        vr = jnp.maximum(sr[1:2] * (1.0 / count_r) - mr * mr, 0.0)
        sc = jax.lax.rsqrt(vr + BN_EPS) * rg_ref[...]
        sh = rb_ref[...] - mr * sc
        y = y + (r_ref[0] * sc + sh)

    o_ref[0] = jnp.maximum(y, 0.0)


def _pool_kernel(x_ref, o_ref):
    o_ref[0] = jnp.sum(x_ref[0], axis=1)                        # (N, C) partial


def _head_kernel(ps_ref, w_ref, b_ref, out_ref, pooled_ref, *, denom):
    pooled = jnp.sum(ps_ref[...], axis=0) * (1.0 / denom)       # (N, C)
    pooled_ref[...] = pooled
    y = jnp.dot(pooled, w_ref[...], preferred_element_type=jnp.float32) + b_ref[...]
    ss = jnp.sum(y * y, axis=1, keepdims=True)
    out_ref[...] = y * jax.lax.rsqrt(jnp.maximum(ss, 1e-24))    # F.normalize(p=2)


# ----------------------------------------------------------------------------
# pallas_call wrappers
# ----------------------------------------------------------------------------
def input_stats(x):
    V, N, T, C = x.shape
    return pl.pallas_call(
        _input_stats_kernel, grid=(N,),
        in_specs=[pl.BlockSpec((V, 1, T, C), lambda n: (0, n, 0, 0))],
        out_specs=pl.BlockSpec((1, 2, C), lambda n: (n, 0, 0)),
        out_shape=jax.ShapeDtypeStruct((N, 2, C), jnp.float32),
        compiler_params=_cparams(),
    )(x)


def sgc_compute(x, w_all, bias_eff, at_py, pre=None):
    V, N, T, Cin = x.shape
    Cout = w_all.shape[-1]
    args = [x]
    in_specs = [pl.BlockSpec((V, 1, T, Cin), lambda n: (0, n, 0, 0))]
    if pre is not None:
        pst, pg, pb = pre
        args += [pst, pg, pb]
        in_specs += [_full_spec(pst), _full_spec(pg), _full_spec(pb)]
    args += [w_all, bias_eff]
    in_specs += [_full_spec(w_all), _full_spec(bias_eff)]
    kern = functools.partial(_sgc_kernel, at=at_py, pre_bn=pre is not None,
                             pre_count=float(N * T * V))
    return pl.pallas_call(
        kern, grid=(N,), in_specs=in_specs,
        out_specs=(pl.BlockSpec((V, 1, T, Cout), lambda n: (0, n, 0, 0)),
                   pl.BlockSpec((1, 2, Cout), lambda n: (n, 0, 0))),
        out_shape=(jax.ShapeDtypeStruct((V, N, T, Cout), jnp.float32),
                   jax.ShapeDtypeStruct((N, 2, Cout), jnp.float32)),
        compiler_params=_cparams(),
    )(*args)


def tcn_compute(y1, st1, g1, b1, wt, bt, stride):
    V, N, T, C = y1.shape
    # TODO(synk): odd T with stride 2 needs asymmetric parity padding; ResGCN
    # configs used here always have T divisible by the stride.
    assert T % stride == 0
    t_out = (T - 1) // stride + 1
    if stride == 1:
        scratch = pltpu.VMEM((N, T + WIN - 1, C), jnp.bfloat16)
    else:
        scratch = pltpu.VMEM((2, N, T // 2 + 4, C), jnp.bfloat16)
    kern = functools.partial(_tcn_kernel, stride=stride, count1=float(N * T * V),
                             t_in=T, t_out=t_out)
    return pl.pallas_call(
        kern, grid=(V,),
        in_specs=[pl.BlockSpec((1, N, T, C), lambda v: (v, 0, 0, 0)),
                  _full_spec(st1), _full_spec(g1), _full_spec(b1),
                  _full_spec(wt), _full_spec(bt)],
        out_specs=(pl.BlockSpec((1, N, t_out, C), lambda v: (v, 0, 0, 0)),
                   pl.BlockSpec((1, 2, C), lambda v: (v, 0, 0))),
        out_shape=(jax.ShapeDtypeStruct((V, N, t_out, C), jnp.float32),
                   jax.ShapeDtypeStruct((V, 2, C), jnp.float32)),
        scratch_shapes=[scratch],
        compiler_params=_cparams(),
    )(y1, st1, g1, b1, wt, bt)


def res_compute(x, wr, br, stride):
    V, N, T, Cin = x.shape
    Cout = wr.shape[-1]
    assert T % stride == 0
    t_out = (T - 1) // stride + 1
    kern = functools.partial(_res_kernel, stride=stride, t_out=t_out)
    return pl.pallas_call(
        kern, grid=(V,),
        in_specs=[pl.BlockSpec((1, N, T, Cin), lambda v: (v, 0, 0, 0)),
                  _full_spec(wr), _full_spec(br)],
        out_specs=(pl.BlockSpec((1, N, t_out, Cout), lambda v: (v, 0, 0, 0)),
                   pl.BlockSpec((1, 2, Cout), lambda v: (v, 0, 0))),
        out_shape=(jax.ShapeDtypeStruct((V, N, t_out, Cout), jnp.float32),
                   jax.ShapeDtypeStruct((V, 2, Cout), jnp.float32)),
        compiler_params=_cparams(),
    )(x, wr, br)


def finalize(y2, st2, g2, b2, res_mode, res_args):
    V, N, T, C = y2.shape
    count = float(V * N * T)
    args = [y2, st2, g2, b2]
    in_specs = [pl.BlockSpec((1, N, T, C), lambda v: (v, 0, 0, 0)),
                _full_spec(st2), _full_spec(g2), _full_spec(b2)]
    count_r = None
    if res_mode == "identity":
        (rx,) = res_args
        args.append(rx)
        in_specs.append(pl.BlockSpec((1, N, T, C), lambda v: (v, 0, 0, 0)))
    elif res_mode == "bn":
        yr, str_, gr, br_ = res_args
        args += [yr, str_, gr, br_]
        in_specs += [pl.BlockSpec((1, N, T, C), lambda v: (v, 0, 0, 0)),
                     _full_spec(str_), _full_spec(gr), _full_spec(br_)]
        count_r = count
    kern = functools.partial(_finalize_kernel, res_mode=res_mode,
                             count=count, count_r=count_r)
    return pl.pallas_call(
        kern, grid=(V,), in_specs=in_specs,
        out_specs=pl.BlockSpec((1, N, T, C), lambda v: (v, 0, 0, 0)),
        out_shape=jax.ShapeDtypeStruct((V, N, T, C), jnp.float32),
        compiler_params=_cparams(),
    )(*args)


def global_pool(x):
    V, N, T, C = x.shape
    return pl.pallas_call(
        _pool_kernel, grid=(V,),
        in_specs=[pl.BlockSpec((1, N, T, C), lambda v: (v, 0, 0, 0))],
        out_specs=pl.BlockSpec((1, N, C), lambda v: (v, 0, 0)),
        out_shape=jax.ShapeDtypeStruct((V, N, C), jnp.float32),
        compiler_params=_cparams(),
    )(x)


def head(ps, w_fc, b_fc, denom):
    N, C = ps.shape[1], ps.shape[2]
    ncls = w_fc.shape[-1]
    kern = functools.partial(_head_kernel, denom=float(denom))
    return pl.pallas_call(
        kern,
        in_specs=[_VMEM, _VMEM, _VMEM],
        out_specs=(_VMEM, _VMEM),
        out_shape=(jax.ShapeDtypeStruct((N, ncls), jnp.float32),
                   jax.ShapeDtypeStruct((N, C), jnp.float32)),
        compiler_params=_cparams(parallel=False),
    )(ps, w_fc, b_fc)


# ----------------------------------------------------------------------------
# ResGCN_Module / branches / full network (host glue)
# ----------------------------------------------------------------------------
def resgcn_module_forward(x, at_py, p, pre=None):
    """One ResGCN_Module ('Basic').  x: (V, N, T, Cin) -> (V, N, T//s, Cout)."""
    V, N, T, Cin = x.shape
    Cout, stride = p["cout"], p["stride"]
    y1, st1 = sgc_compute(x, p["w_all"], p["bias_eff"], at_py, pre)
    y2, st2 = tcn_compute(y1, st1, p["g_sc"], p["b_sc"], p["wt"], p["bt"], stride)
    if p["initial"]:
        res_mode, res_args = "zero", ()
    elif stride == 1 and Cin == Cout:
        res_mode, res_args = "identity", (x,)
    else:
        yr, str_ = res_compute(x, p["wr"], p["br"], stride)
        res_mode, res_args = "bn", (yr, str_, p["g_r"], p["b_r"])
    return finalize(y2, st2, p["g_tc"], p["b_tc"], res_mode, res_args)


def input_branch_forward(x, at_py, bp):
    st0 = input_stats(x)      # input BN stats; normalize fused into first SGC
    mods = bp["modules"]
    x = resgcn_module_forward(x, at_py, mods[0], pre=(st0, bp["g_in"], bp["b_in"]))
    for p in mods[1:]:
        x = resgcn_module_forward(x, at_py, p)
    return x


def resgcn_forward(x5, A, params):
    """x5: (N, num_input, C, T, V) -- PyTorch input layout."""
    K, V, _ = A.shape
    A_np = jax.device_get(A)
    # baked adjacency: at[k][w][v] = A[k, v, w] (zero entries get skipped)
    at_py = tuple(tuple(tuple(float(A_np[k, v, w]) for v in range(V))
                        for w in range(V)) for k in range(K))

    branch_outs = []
    for i, bp in enumerate(params["branches"]):
        xb = jnp.transpose(x5[:, i], (3, 0, 2, 1))   # (N,C,T,V) -> (V,N,T,C)
        branch_outs.append(input_branch_forward(xb, at_py, bp))
    x = jnp.concatenate(branch_outs, axis=-1)        # torch.cat(dim=1) == channel concat

    hidden_states = []
    for p in params["main"]:
        x = resgcn_module_forward(x, at_py, p)
        hidden_states.append(x)                      # stored in (V, N, T, C) layout

    Vf, Nf, Tf, Cf = x.shape
    ps = global_pool(x)
    out, pooled = head(ps, params["w_fc"], params["b_fc"], Tf * Vf)
    hidden_states.append(pooled)                     # torch: (N,256,1,1); here (N,256)
    return out, hidden_states


# ----------------------------------------------------------------------------
# Deterministic parameter construction (mirrors init_param / zero_init_lastBN)
# ----------------------------------------------------------------------------
class DetInit:
    def __init__(self, seed=0):
        self._key = jax.random.PRNGKey(seed)
        self._n = 0

    def normal(self, shape, std):
        self._n += 1
        k = jax.random.fold_in(self._key, self._n)
        return (std * jax.random.normal(k, shape)).astype(jnp.float32)


def make_module_params(init, A, cin, cout, stride, initial):
    K, V, _ = A.shape
    p = {"cin": cin, "cout": cout, "stride": stride, "initial": initial}
    # SpatialGraphConv: Conv2d(cin, K*cout, 1) -> kaiming fan_out = K*cout
    wg = init.normal((K, cin, cout), math.sqrt(2.0 / (K * cout)))
    p["w_all"] = wg.reshape(K * cin, cout).astype(jnp.bfloat16)   # (K*Cin, Cout)
    bg = jnp.zeros((K, cout), jnp.float32)
    col = jnp.sum(A, axis=1)                                      # (K, V)
    p["bias_eff"] = jnp.dot(col.T, bg)                            # (V, Cout)
    p["g_sc"] = jnp.ones((1, cout), jnp.float32)
    p["b_sc"] = jnp.zeros((1, cout), jnp.float32)
    # Temporal conv: Conv2d(cout, cout, (9,1)) -> fan_out = cout*9
    p["wt"] = init.normal((WIN, cout, cout),
                          math.sqrt(2.0 / (cout * WIN))).astype(jnp.bfloat16)
    p["bt"] = jnp.zeros((1, cout), jnp.float32)
    p["g_tc"] = jnp.ones((1, cout), jnp.float32)
    p["b_tc"] = jnp.zeros((1, cout), jnp.float32)
    if (not initial) and (stride != 1 or cin != cout):
        p["wr"] = init.normal((cin, cout), math.sqrt(2.0 / cout)).astype(jnp.bfloat16)
        p["br"] = jnp.zeros((1, cout), jnp.float32)
        p["g_r"] = jnp.ones((1, cout), jnp.float32)
        p["b_r"] = jnp.zeros((1, cout), jnp.float32)
    return p


def build_params(structure, num_input, num_channel, num_class, A, seed=0):
    init = DetInit(seed)
    branches = []
    for _ in range(num_input):
        mods = [make_module_params(init, A, num_channel, 64, 1, True)]
        mods += [make_module_params(init, A, 64, 64, 1, True) for _ in range(structure[0] - 1)]
        mods += [make_module_params(init, A, 64, 64, 1, False) for _ in range(structure[1] - 1)]
        mods += [make_module_params(init, A, 64, 32, 1, False)]
        branches.append({
            "g_in": jnp.ones((1, num_channel), jnp.float32),
            "b_in": jnp.zeros((1, num_channel), jnp.float32),
            "modules": mods,
        })
    main = [make_module_params(init, A, 32 * num_input, 128, 2, False)]
    main += [make_module_params(init, A, 128, 128, 1, False) for _ in range(structure[2] - 1)]
    main += [make_module_params(init, A, 128, 256, 2, False)]
    main += [make_module_params(init, A, 256, 256, 1, False) for _ in range(structure[3] - 1)]
    w_fc = init.normal((256, num_class), 0.001)
    b_fc = jnp.zeros((1, num_class), jnp.float32)
    return {"branches": branches, "main": main, "w_fc": w_fc, "b_fc": b_fc}


def build_adjacency(V, K):
    """Deterministic ring-skeleton adjacency A[k, v, w] (hop-k, column-normalized)."""
    idx = jnp.arange(V)
    d = (idx[:, None] - idx[None, :]) % V
    dist = jnp.minimum(d, V - d)
    mats = []
    for k in range(K):
        m = (dist == k).astype(jnp.float32)
        m = m / jnp.maximum(m.sum(axis=0, keepdims=True), 1.0)
        mats.append(m)
    return jnp.stack(mats)  # (K, V, V)


# ----------------------------------------------------------------------------
if __name__ == "__main__":
    N, T, V = 2, 16, 8
    num_input, num_channel, num_class = 2, 3, 8
    structure = (1, 2, 2, 2)

    key = jax.random.PRNGKey(0)
    x = jax.random.normal(key, (N, num_input, num_channel, T, V), dtype=jnp.float32)

    A = build_adjacency(V, K_SPATIAL)
    params = build_params(structure, num_input, num_channel, num_class, A, seed=0)

    out, hidden_states = resgcn_forward(x, A, params)
    out = jax.block_until_ready(out)

    assert out.shape == (N, num_class)
    assert bool(jnp.all(jnp.isfinite(out)))
    norms = jnp.linalg.norm(out, axis=1)
    assert bool(jnp.all(jnp.abs(norms - 1.0) < 1e-3)), norms  # F.normalize(p=2, dim=1)
    assert hidden_states[-1].shape == (N, 256)
    print("KERNEL_OK")
</pallas_src>

<mosaic_0001>
module attributes {stable_mosaic.version = 11 : i64} {
  func.func @_input_stats_kernel(%arg0: i32, %arg1: memref<8x1x16x3xf32, #tpu.memory_space<vmem>>, %arg2: memref<1x2x3xf32, #tpu.memory_space<vmem>>) attributes {dimension_semantics = [#tpu.dimension_semantics<parallel>], iteration_bounds = array<i64: 2>, scalar_prefetch = 0 : i64, scratch_operands = 0 : i64, tpu.core_type = #tpu.core_type<tc>, window_params = [{transform_indices = @transform_0, window_bounds = array<i64: 8, 1, 16, 3>}, {transform_indices = @transform_1, window_bounds = array<i64: 1, 2, 3>}]} {
    %c0 = arith.constant 0 : index
    %c0_0 = arith.constant 0 : index
    %c0_1 = arith.constant 0 : index
    %c0_2 = arith.constant 0 : index
    %0 = vector.load %arg1[%c0, %c0_0, %c0_1, %c0_2] : memref<8x1x16x3xf32, #tpu.memory_space<vmem>>, vector<8x1x16x3xf32>
    %1 = vector.shape_cast %0 : vector<8x1x16x3xf32> to vector<128x3xf32>
    %cst = arith.constant dense<0.000000e+00> : vector<3xf32>
    %2 = vector.multi_reduction <add>, %1, %cst [0] : vector<128x3xf32> to vector<3xf32>
    %3 = vector.shape_cast %2 : vector<3xf32> to vector<1x3xf32>
    %4 = arith.mulf %1, %1 : vector<128x3xf32>
    %cst_3 = arith.constant dense<0.000000e+00> : vector<3xf32>
    %5 = vector.multi_reduction <add>, %4, %cst_3 [0] : vector<128x3xf32> to vector<3xf32>
    %6 = vector.shape_cast %5 : vector<3xf32> to vector<1x3xf32>
    %7 = tpu.concatenate %3, %6 in 0 : vector<1x3xf32>, vector<1x3xf32> -> vector<2x3xf32>
    %c0_4 = arith.constant 0 : index
    %c0_5 = arith.constant 0 : index
    %c0_6 = arith.constant 0 : index
    %8 = vector.load %arg2[%c0_4, %c0_5, %c0_6] : memref<1x2x3xf32, #tpu.memory_space<vmem>>, vector<1x2x3xf32>
    %9 = vector.shape_cast %8 : vector<1x2x3xf32> to vector<2x3xf32>
    %10 = vector.shape_cast %7 : vector<2x3xf32> to vector<1x2x3xf32>
    tpu.vector_store %arg2[%c0_4, %c0_5, %c0_6], %10 {strides = array<i32>} : memref<1x2x3xf32, #tpu.memory_space<vmem>>, vector<1x2x3xf32>,
    return
  }
  func.func @transform_0(%arg0: i32) -> (i32, i32, i32, i32) {
    %c0_i32 = arith.constant 0 : i32
    %c0_i32_0 = arith.constant 0 : i32
    %c0_i32_1 = arith.constant 0 : i32
    %c0_i32_2 = arith.constant 0 : i32
    return %c0_i32, %arg0, %c0_i32_0, %c0_i32_1 : i32, i32, i32, i32
  }
  func.func @transform_1(%arg0: i32) -> (i32, i32, i32) {
    %c0_i32 = arith.constant 0 : i32
    %c0_i32_0 = arith.constant 0 : i32
    %c0_i32_1 = arith.constant 0 : i32
    return %arg0, %c0_i32, %c0_i32_0 : i32, i32, i32
  }
}

</mosaic_0001>

<bundles_post_ra>
// kernel: tpu_custom_call.1
= control target key start
LH: loop header
LB: loop body
LE: loop exit
PB: predicated region body
PF: predicated region fallthrough
CT: control target
= control target key end

     0   :  { %6 = vsyncpa [#allocation4], 0  ;;  %s706_s0 = inlined_call_operand.vmem [shape: f32[8,2,16,3], index: 0, kind: input, shape index: {}]   ;;  %s707_s1 = inlined_call_operand.hbm [shape: f32[2,2,3], index: 1, kind: output, shape index: {}]  }
   0x1   :  { %8 = vsyncpa [#allocation4 + $0x1], 0  ;;  %s528_s6 = smov 0   ;;  %s530_s7 = smov 0  }
   0x2   :  { %s532_s8 = smov 0   ;;  %s534_s9 = smov 0  }
   0x3 LB: > { %s399_s10 = sadd.s32 4294967295, %s515_s9   ;;  %s400_s11 = sadd.s32 4294967294, %s515_s9   ;;  %s515_s9 = sphi %s534_s9, %s713_s9   ;;  %s511_s8 = sphi %s532_s8, %s712_s8   ;;  %s507_s7 = sphi %s530_s7, %s711_s7   ;;  %s503_s6 = sphi %s528_s6, %s710_s6  }
   0x4   : > { %s551_s12 = sadd.s32 1, %s515_s9   ;;  %s21_s13 = sadd.s32 1, %s511_s8 }
   0x5   : > { %s18_s14 = ssub.s32 %s515_s9, %s551_s12  ;;  %p28_p0 = scmp.ne.s32.totalorder %s511_s8, %s507_s7 }
   0x6   : > { %p19_p1 = scmp.eq.s32.totalorder %s18_s14, 0  ;;  %p29_p2 = scmp.eq.s32.totalorder %s515_s9, 0 }
   0x7   : > { %p58_p3 = scmp.eq.s32.totalorder %s399_s10, 1  ;;  %p63_p4 = scmp.ne.s32.totalorder %s507_s7, %s503_s6 }
   0x8   : > { %s564_s15 = scalar_select %p19_p1, %s511_s8, %s21_s13  }
   0x9   : > { %p30_p5 = por %p29_p2, %p28_p0  ;;  %p566_p6 = por %p58_p3, %p28_p0 }
   0xa   : > { %p64_p7 = scmp.eq.s32.totalorder %s400_s11, 1  ;;  %p402_p9 = scmp.ge.s32.totalorder %s515_s9, 2 }
   0xc   : > { %p570_p8 = por %p64_p7, %p63_p4  ;;  %80 = sbr.rel (%p402_p9) target bundleno = 31 (0x1f), region = 16 }
  0x13   : > { %83 = sbr.rel (!%p30_p5) target bundleno = 31 (0x1f), region = 20  ;;  %s85_s18 = sand.u32 (%p30_p5), 1, %s511_s8  }
  0x14   : > { %s413_s19 = sshll.u32 (%p30_p5), %s515_s9, 4  ;;  %s403_s20 = sshll.u32 (%p30_p5), %s85_s18, 7 }
  0x15   : > { %s582_s23 = scalar_lea.vmem (%p30_p5), %s706_s0, %s413_s19  ;;  %s87_s24 = scalar_lea.vmem (%p30_p5), [#allocation2], %s403_s20 }
  0x16   : > { %v148_v0 = vld [vmem:[%s582_s23] sm:$0xff] (%p30_p5)  ;;  %v150_v1 = vld [vmem:[%s582_s23 + $0x8] sm:$0xff] (%p30_p5) }
  0x17   : > { %v152_v2 = vld [vmem:[%s582_s23 + $0x20] sm:$0xff] (%p30_p5)  ;;  %149 = vst [vmem:[%s87_s24] sm:$0xff] (%p30_p5), %v148_v0  ;;  %151 = vst [vmem:[%s87_s24 + $0x8] sm:$0xff] (%p30_p5), %v150_v1  ;;  %v154_v3 = vld [vmem:[%s582_s23 + $0x28] sm:$0xff] (%p30_p5) }
  0x18   : > { %153 = vst [vmem:[%s87_s24 + $0x10] sm:$0xff] (%p30_p5), %v152_v2  ;;  %v156_v4 = vld [vmem:[%s582_s23 + $0x40] sm:$0xff] (%p30_p5)  ;;  %v158_v5 = vld [vmem:[%s582_s23 + $0x48] sm:$0xff] (%p30_p5)  ;;  %155 = vst [vmem:[%s87_s24 + $0x18] sm:$0xff] (%p30_p5), %v154_v3 }
  0x19   : > { %157 = vst [vmem:[%s87_s24 + $0x20] sm:$0xff] (%p30_p5), %v156_v4  ;;  %159 = vst [vmem:[%s87_s24 + $0x28] sm:$0xff] (%p30_p5), %v158_v5  ;;  %v160_v6 = vld [vmem:[%s582_s23 + $0x60] sm:$0xff] (%p30_p5)  ;;  %v162_v7 = vld [vmem:[%s582_s23 + $0x68] sm:$0xff] (%p30_p5) }
  0x1a   : > { %v164_v8 = vld [vmem:[%s582_s23 + $0x80] sm:$0xff]  ;;  %161 = vst [vmem:[%s87_s24 + $0x30] sm:$0xff] %v160_v6  ;;  %163 = vst [vmem:[%s87_s24 + $0x38] sm:$0xff] %v162_v7  ;;  %v166_v9 = vld [vmem:[%s582_s23 + $0x88] sm:$0xff] }
  0x1b   : > { %165 = vst [vmem:[%s87_s24 + $0x40] sm:$0xff] %v164_v8  ;;  %v168_v10 = vld [vmem:[%s582_s23 + $0xa0] sm:$0xff]  ;;  %v170_v11 = vld [vmem:[%s582_s23 + $0xa8] sm:$0xff]  ;;  %167 = vst [vmem:[%s87_s24 + $0x48] sm:$0xff] %v166_v9 }
  0x1c   : > { %169 = vst [vmem:[%s87_s24 + $0x50] sm:$0xff] %v168_v10  ;;  %171 = vst [vmem:[%s87_s24 + $0x58] sm:$0xff] %v170_v11  ;;  %v172_v12 = vld [vmem:[%s582_s23 + $0xc0] sm:$0xff]  ;;  %v174_v13 = vld [vmem:[%s582_s23 + $0xc8] sm:$0xff] }
  0x1d   : > { %v176_v14 = vld [vmem:[%s582_s23 + $0xe0] sm:$0xff]  ;;  %173 = vst [vmem:[%s87_s24 + $0x60] sm:$0xff] %v172_v12  ;;  %175 = vst [vmem:[%s87_s24 + $0x68] sm:$0xff] %v174_v13  ;;  %v178_v15 = vld [vmem:[%s582_s23 + $0xe8] sm:$0xff] }
  0x1e   : > { %177 = vst [vmem:[%s87_s24 + $0x70] sm:$0xff] %v176_v14  ;;  %179 = vst [vmem:[%s87_s24 + $0x78] sm:$0xff] %v178_v15 }
  0x1f PF: > { %p406_p10 = scmp.ge.s32.totalorder %s515_s9, 1  ;;  %p184_p11 = scmp.lt.s32.totalorder %s515_s9, 3 }
  0x21   : > { %p185_p12 = pnand %p406_p10, %p184_p11 }
  0x22   : > { %s603_s25 = sand.u32 (!%p185_p12), 1, %s507_s7   ;;  %vm226_vm0 = vcmask (!%p185_p12), 23552   ;;  %s410_s2 = sshll.u32 (!%p185_p12), %s399_s10, 5  ;;  %vm317_vm1 = vcmask (!%p185_p12), 1040384   ;;  %vm319_vm2 = vcmask (!%p185_p12), 17408  }
  0x23   : > { %188 = sbr.rel (%p185_p12) target bundleno = 99 (0x63), region = 58  ;;  %s407_s26 = sshll.u32 (!%p185_p12), %s603_s25, 7 }
  0x24   : > { %s606_s27 = scalar_lea.vmem (!%p185_p12), [#allocation2], %s407_s26  ;;  %s408_s28 = sshll.u32 (!%p185_p12), %s603_s25, 1 }
  0x25   : > { %v210_v16 = vld [vmem:[%s606_s27] sm:$0xff] (!%p185_p12)  ;;  %v211_v17 = vld [vmem:[%s606_s27 + $0x8] sm:$0xff] (!%p185_p12)  ;;  %v212_v18 = vld [vmem:[%s606_s27 + $0x10] sm:$0xff] (!%p185_p12)  ;;  %s209_s29 = scalar_lea.vmem (!%p185_p12), [#allocation3], %s408_s28  ;;  %s664_s5 = scalar_lea.hbm (!%p185_p12), %s707_s1, %s410_s2 }
  0x26   : > { %v227_v19 = vsel (!%p185_p12), %vm226_vm0, %v210_v16, 0.0  ;;  %v228_v20 = vsel (!%p185_p12), %vm226_vm0, %v211_v17, 0.0  ;;  %v230_v21 = vsel (!%p185_p12), %vm226_vm0, %v212_v18, 0.0  ;;  %v213_v22 = vld [vmem:[%s606_s27 + $0x18] sm:$0xff] (!%p185_p12)  ;;  %v214_v25 = vld [vmem:[%s606_s27 + $0x20] sm:$0xff] (!%p185_p12)  ;;  %v215_v28 = vld [vmem:[%s606_s27 + $0x28] sm:$0xff] (!%p185_p12)  ;;  %v264_v30 = vmul.f32 (!%p185_p12), %v210_v16, %v210_v16 }
  0x27   : > { %v229_v23 = vadd.f32 (!%p185_p12), %v228_v20, %v227_v19  ;;  %v232_v24 = vsel (!%p185_p12), %vm226_vm0, %v213_v22, 0.0  ;;  %v234_v27 = vsel (!%p185_p12), %vm226_vm0, %v214_v25, 0.0  ;;  %v265_v31 = vmul.f32 (!%p185_p12), %v211_v17, %v211_v17  ;;  %v216_v34 = vld [vmem:[%s606_s27 + $0x30] sm:$0xff] (!%p185_p12)  ;;  %v217_v39 = vld [vmem:[%s606_s27 + $0x38] sm:$0xff] (!%p185_p12)  ;;  %v218_v46 = vld [vmem:[%s606_s27 + $0x40] sm:$0xff] (!%p185_p12)  ;;  %s335_s30 = sshll.u32 (!%p185_p12), %s209_s29, 4  ;;  %s659_s30 = int_to_ptr.vmem [resolvable:$true] %s335_s30 }
  0x28   : > { %v266_v32 = vmul.f32 (!%p185_p12), %v212_v18, %v212_v18  ;;  %v236_v33 = vsel (!%p185_p12), %vm226_vm0, %v215_v28, 0.0  ;;  %v267_v36 = vmul.f32 (!%p185_p12), %v213_v22, %v213_v22  ;;  %v238_v37 = vsel (!%p185_p12), %vm226_vm0, %v216_v34, 0.0  ;;  %v219_v52 = vld [vmem:[%s606_s27 + $0x48] sm:$0xff] (!%p185_p12)  ;;  %v220_v58 = vld [vmem:[%s606_s27 + $0x50] sm:$0xff] (!%p185_p12)  ;;  %v221_v0 = vld [vmem:[%s606_s27 + $0x58] sm:$0xff] (!%p185_p12)  ;;  %s322_s11 = scalar_lea.sflag (!%p185_p12), [#allocation4], %s603_s25 }
  0x29   : > { %v231_v26 = vadd.f32 (!%p185_p12), %v230_v21, %v229_v23  ;;  %v268_v38 = vmul.f32 (!%p185_p12), %v214_v25, %v214_v25  ;;  %v280_v41 = vsel (!%p185_p12), %vm226_vm0, %v264_v30, 0.0  ;;  %v281_v42 = vsel (!%p185_p12), %vm226_vm0, %v265_v31, 0.0  ;;  %v222_v6 = vld [vmem:[%s606_s27 + $0x60] sm:$0xff] (!%p185_p12)  ;;  %v223_v12 = vld [vmem:[%s606_s27 + $0x68] sm:$0xff] (!%p185_p12)  ;;  %v224_v18 = vld [vmem:[%s606_s27 + $0x70] sm:$0xff] (!%p185_p12)  ;;  %s453_s13 = scalar_lea.vmem (!%p185_p12), %s659_s30, 32 }
  0x2a   : > { %v283_v43 = vsel %vm226_vm0, %v266_v32, 0.0  ;;  %v240_v44 = vsel %vm226_vm0, %v217_v39, 0.0  ;;  %v282_v45 = vadd.f32 %v281_v42, %v280_v41  ;;  %v269_v48 = vmul.f32 %v215_v28, %v215_v28  ;;  %p454_p13 = scmp.ne.s32.totalorder %s659_s30, %s453_s13  ;;  %s517_s10 = smov [#allocation3]  }
  0x2b   : > { %v233_v29 = vadd.f32 %v232_v24, %v231_v26  ;;  %v285_v49 = vsel %vm226_vm0, %v267_v36, 0.0  ;;  %v242_v50 = vsel %vm226_vm0, %v218_v46, 0.0  ;;  %v270_v54 = vmul.f32 %v216_v34, %v216_v34  ;;  %v225_v24 = vld [vmem:[%s606_s27 + $0x78] sm:$0xff]  ;;  %s457_s14 = sshll.u32 %s517_s10, 4  ;;  %s458_s14 = int_to_ptr.vmem [resolvable:$false] %s457_s14 }
  0x2c   : > { %v284_v51 = vadd.f32 %v283_v43, %v282_v45  ;;  %v287_v55 = vsel %vm226_vm0, %v268_v38, 0.0  ;;  %v244_v56 = vsel %vm226_vm0, %v219_v52, 0.0  ;;  %v271_v60 = vmul.f32 %v217_v39, %v217_v39  ;;  %p455_p0 = pnand %p454_p13, %p566_p6  ;;  %s459_s18 = scalar_lea.vmem %s458_s14, 64 }
  0x2d   : > { %v235_v35 = vadd.f32 %v234_v27, %v233_v29  ;;  %v289_v61 = vsel %vm226_vm0, %v269_v48, 0.0  ;;  %v246_v62 = vsel %vm226_vm0, %v220_v58, 0.0  ;;  %v272_v2 = vmul.f32 %v218_v46, %v218_v46  ;;  %p460_p2 = scmp.lt.s32.totalorder %s659_s30, %s458_s14  ;;  %p461_p3 = scmp.lt.s32.totalorder %s459_s18, %s453_s13 }
  0x2e   : > { %v286_v57 = vadd.f32 %v285_v49, %v284_v51  ;;  %v291_v3 = vsel %vm226_vm0, %v270_v54, 0.0  ;;  %v248_v4 = vsel %vm226_vm0, %v221_v0, 0.0  ;;  %v273_v8 = vmul.f32 %v219_v52, %v219_v52  ;;  %p456_p1 = pneg %p455_p0 }
  0x2f   : > { %v237_v40 = vadd.f32 %v236_v33, %v235_v35  ;;  %v293_v9 = vsel %vm226_vm0, %v271_v60, 0.0  ;;  %v250_v10 = vsel %vm226_vm0, %v222_v6, 0.0  ;;  %v274_v14 = vmul.f32 %v220_v58, %v220_v58  ;;  %p462_p4 = por %p461_p3, %p460_p2 }
  0x30   : > { %v288_v63 = vadd.f32 %v287_v55, %v286_v57  ;;  %v295_v15 = vsel %vm226_vm0, %v272_v2, 0.0  ;;  %v252_v16 = vsel %vm226_vm0, %v223_v12, 0.0  ;;  %v275_v20 = vmul.f32 %v221_v0, %v221_v0 }
  0x31   : > { %v239_v47 = vadd.f32 %v238_v37, %v237_v40  ;;  %v297_v21 = vsel %vm226_vm0, %v273_v8, 0.0  ;;  %v254_v22 = vsel %vm226_vm0, %v224_v18, 0.0  ;;  %v276_v26 = vmul.f32 %v222_v6, %v222_v6  ;;  %p463_p5 = pnand %p462_p4, %p456_p1 }
  0x32   : > { %v290_v5 = vadd.f32 %v289_v61, %v288_v63  ;;  %v299_v27 = vsel %vm226_vm0, %v274_v14, 0.0  ;;  %v256_v28 = vsel %vm226_vm0, %v225_v24, 0.0  ;;  %v277_v31 = vmul.f32 %v223_v12, %v223_v12 }
  0x33   : > { %v241_v53 = vadd.f32 %v240_v44, %v239_v47  ;;  %v301_v32 = vsel %vm226_vm0, %v275_v20, 0.0  ;;  %v278_v35 = vmul.f32 %v224_v18, %v224_v18  ;;  %v303_v36 = vsel %vm226_vm0, %v276_v26, 0.0 }
  0x34   : > { %v292_v11 = vadd.f32 %v291_v3, %v290_v5  ;;  %v279_v39 = vmul.f32 %v225_v24, %v225_v24  ;;  %v305_v40 = vsel %vm226_vm0, %v277_v31, 0.0 }
  0x35   : > { %v243_v59 = vadd.f32 %v242_v50, %v241_v53  ;;  %v307_v43 = vsel %vm226_vm0, %v278_v35, 0.0 }
  0x36   : > { %v294_v17 = vadd.f32 %v293_v9, %v292_v11  ;;  %v309_v45 = vsel %vm226_vm0, %v279_v39, 0.0 }
  0x37   : > { %v245_v1 = vadd.f32 %v244_v56, %v243_v59 }
  0x38   : > { %v296_v23 = vadd.f32 %v295_v15, %v294_v17 }
  0x39   : > { %v247_v7 = vadd.f32 %v246_v62, %v245_v1 }
  0x3a   : > { %v298_v29 = vadd.f32 %v297_v21, %v296_v23 }
  0x3b   : > { %v249_v13 = vadd.f32 %v248_v4, %v247_v7 }
  0x3c   : > { %v300_v33 = vadd.f32 %v299_v27, %v298_v29 }
  0x3d   : > { %v251_v19 = vadd.f32 %v250_v10, %v249_v13 }
  0x3e   : > { %v302_v37 = vadd.f32 %v301_v32, %v300_v33 }
  0x3f   : > { %v253_v25 = vadd.f32 %v252_v16, %v251_v19 }
  0x40   : > { %v304_v41 = vadd.f32 %v303_v36, %v302_v37 }
  0x41   : > { %v255_v30 = vadd.f32 %v254_v22, %v253_v25 }
  0x42   : > { %v306_v44 = vadd.f32 %v305_v40, %v304_v41 }
  0x43   : > { %v257_v34 = vadd.f32 %v256_v28, %v255_v30 }
  0x44   : > { %v308_v47 = vadd.f32 %v307_v43, %v306_v44 }
  0x45   : > { %v258_v38 = vrot.slane %v257_v34, 4 }
  0x46   : > { %v310_v48 = vadd.f32 %v309_v45, %v308_v47 }
  0x47   : > { %v259_v42 = vadd.f32 %v258_v38, %v257_v34 }
  0x48   : > { %v311_v50 = vrot.slane %v310_v48, 4 }
  0x49   : > { %v260_v46 = vrot.slane %v259_v42, 2 }
  0x4a   : > { %v312_v51 = vadd.f32 %v311_v50, %v310_v48 }
  0x4b   : > { %v261_v49 = vadd.f32 %v260_v46, %v259_v42 }
  0x4c   : > { %v313_v53 = vrot.slane %v312_v51, 2 }
  0x4d   : > { %v262_v52 = vrot.slane %v261_v49, 1 }
  0x4e   : > { %v314_v54 = vadd.f32 %v313_v53, %v312_v51 }
  0x4f   : > { %v263_v55 = vadd.f32 %v262_v52, %v261_v49 }
  0x50   : > { %v315_v56 = vrot.slane %v314_v54, 1 }
  0x52   : > { %v316_v57 = vadd.f32 %v315_v56, %v314_v54 }
  0x54   : > { %v318_v58 = vsel %vm317_vm1, %v263_v55, %v316_v57 }
  0x55   : > { %320 = vst.msk [vmem:[%s209_s29] sm:$0x3] %vm319_vm2, %v318_v58 }
  0x56   : > { %466 = shalt.err (!%p463_p5)
}
  0x57   : > { %s467_s19 = scalar_lea.hbm %s664_s5, 32  ;;  %s471_s22 = scalar_lea.hbm %s707_s1, 64 }
  0x58   : > { %p468_p7 = scmp.ne.s32.totalorder %s664_s5, %s467_s19  ;;  %p472_p12 = scmp.lt.u32.totalorder %s664_s5, %s707_s1 }
  0x59   : > { %p473_p13 = scmp.lt.u32.totalorder %s471_s22, %s467_s19  ;;  %p475_p1 = scmp.lt.u32.totalorder %s467_s19, %s664_s5 }
  0x5a   : > { %p469_p10 = pnand %p468_p7, %p566_p6 }
  0x5b   : > { %p474_p0 = por %p473_p13, %p472_p12 }
  0x5c   : > { %p470_p11 = pneg %p469_p10 }
  0x5d   : > { %p476_p2 = por %p475_p1, %p474_p0 }
  0x5f   : > { %p477_p3 = pnand %p476_p2, %p470_p11 }
  0x61   : > { %480 = shalt.err (!%p477_p3)
}
  0x62   : > { %414 = dma.vmem_to_hbm [thread:$0]  (%p566_p6), %s659_s30, 32, %s664_s5, %s322_s11  }
  0x63 PF: > { %s347_s25 = sand.u32 1, %s503_s6   ;;  %p417_p4 = pnand %p402_p9, %p570_p8 }
  0x64   : > { %s348_s26 = scalar_lea.sflag [#allocation4], %s347_s25 }
  0x65   : > { %498 = dma.done.wait (!%p417_p4), %s348_s26, 32  }
  0x66   : > { %500 = vsyncadd (!%p417_p4), %s348_s26, 4294967264  ;;  %p11_p5 = scmp.ge.s32.totalorder %s551_s12, 4   ;;  %s710_s6 = smov %s507_s7 }
  0x67   : > { %s711_s7 = smov %s511_s8  ;;  %s712_s8 = smov %s564_s15 }
  0x68   : > { %s713_s9 = smov %s551_s12  ;;  %13 = sbr.rel (!%p11_p5) target bundleno = 3 (0x3), region = 102 }
  0x6f   :  { %353 = vsyncpa [#allocation4], 1 }
  0x70   :  { %355 = vsyncpa [#allocation4 + $0x1], 1 }

</bundles_post_ra>
